<compile_context>
chip_gen: v7x
topology: tpu7x:2x2x1
jax: 0.10.0
libtpu: 0.0.40
codegen_flags: <defaults>
</compile_context>

<pallas_src>
import jax
import jax.numpy as jnp
from jax.experimental import pallas as pl
from jax.experimental.pallas import tpu as pltpu

# --- small synthetic config (mirrors config.* fields of the module) ---------
B = 2                      # batch
S = 16                     # pad_size / sequence length
H = 32                     # hidden_size
NUM_FILTERS = 8            # config.num_filters
FILTER_SIZES = (2, 3, 4)   # config.filter_sizes
NUM_CLASSES = 4            # config.num_classes
VOCAB = 30                 # stub vocabulary for the encoder stand-in

# --- derived packed-layout constants -----------------------------------------
VOCAB_PAD = 32                            # vocab rows padded to sublane multiple
PACK = NUM_FILTERS * len(FILTER_SIZES)    # 24 real conv channels [f2|f3|f4]
PACK32 = 32                               # lane-aligned channel block width
LANES = 128                               # 4 shift blocks * 32 lanes
MAX_K = max(FILTER_SIZES)                 # 4 conv shifts
N_TOK = B * S                             # 32 token rows (no extra padding)
OUT_ROWS = 8                              # sublane-dense output rows
NEG = -1e30                               # "invalid position" bias value

# --- constant-slab row offsets (all sublane-aligned) --------------------------
WF_ROW = 0                       # fused emb @ W_all      rows [ 0, 32)
WFC_ROW = VOCAB_PAD              # padded FC weight       rows [32, 64)
BMASK_ROW = WFC_ROW + PACK32     # conv bias + validity   rows [64, 96)
BFC_ROW = BMASK_ROW + N_TOK      # padded FC bias         row   96
CONST_ROWS = BFC_ROW + 8         # 104


def textcnn_kernel(tok_ref, const_ref, out_ref):
    """tok_ref:(N_TOK,2) f32 [token_id, mask]; const_ref:(CONST_ROWS,128) f32;
    out_ref:(8,128) f32."""
    # --- stub encoder + packed conv weights in ONE MXU pass -------------------
    # onehot rows carry the attention mask; W_fused = emb @ W_all (host-fused).
    ctx = tok_ref[:, 0:1].astype(jnp.int32)                         # (32,1)
    msk = tok_ref[:, 1:2]                                           # (32,1)
    ids = jax.lax.broadcasted_iota(jnp.int32, (N_TOK, VOCAB_PAD), 1)
    onehot = jnp.where(ids == ctx, msk, 0.0)                        # (32,32)
    proj = jnp.dot(onehot, const_ref[WF_ROW:WF_ROW + VOCAB_PAD, :],
                   preferred_element_type=jnp.float32)              # (32,128)

    # --- conv outputs = shifted sums of 32-lane blocks (XLU rolls + VPU adds) -
    acc = proj[:, 0:PACK32]                                         # shift j=0
    for j in range(1, MAX_K):
        rolled = pltpu.roll(proj, shift=N_TOK - j, axis=0)          # row r <- r+j
        acc = acc + rolled[:, j * PACK32:(j + 1) * PACK32]

    # --- bias + validity folded into one constant; ReLU zeroes invalid rows ---
    act = jnp.maximum(
        acc + const_ref[BMASK_ROW:BMASK_ROW + N_TOK, 0:PACK32], 0.0)  # (32,32)

    # --- per-batch max-pool over time, pad rows to a dense (8,32) FC input ----
    pooled = jnp.max(act.reshape(B, S, PACK32), axis=1)             # (B,32)
    feat = jnp.concatenate(
        [pooled, jnp.zeros((OUT_ROWS - B, PACK32), jnp.float32)], axis=0)

    # --- dropout == identity at inference; lane-padded FC, dense (8,128) store
    out_ref[...] = (jnp.dot(feat, const_ref[WFC_ROW:WFC_ROW + PACK32, :],
                            preferred_element_type=jnp.float32)
                    + const_ref[BFC_ROW:BFC_ROW + 1, :])


# --- one-time host-side constant packing (hoisted out of the forward path) ----
def prepare_constants(emb, conv_ws, conv_bs, wfc, bfc):
    # W_all[:, j*32 + fi*8 : ...] = conv filter fi, shift j (zeros if j >= k_fi
    # or for padding channels 24:32); then fuse with the embedding table.
    w_all = jnp.zeros((H, LANES), jnp.float32)
    b_conv = jnp.zeros((PACK32,), jnp.float32)
    for fi, k in enumerate(FILTER_SIZES):
        for j in range(k):
            c0 = j * PACK32 + fi * NUM_FILTERS
            w_all = w_all.at[:, c0:c0 + NUM_FILTERS].set(conv_ws[fi][j])
        b_conv = b_conv.at[fi * NUM_FILTERS:(fi + 1) * NUM_FILTERS].set(
            conv_bs[fi][0])
    w_fused = emb @ w_all                                            # (32,128)

    # conv bias where the time position is valid for that filter, -1e30 else
    # (ReLU turns invalid/padding positions into exact zeros before max-pool).
    t = jnp.arange(N_TOK) % S
    thr = jnp.array([S - FILTER_SIZES[c // NUM_FILTERS] + 1 if c < PACK else 0
                     for c in range(PACK32)], jnp.int32)
    bias_mask = jnp.where(t[:, None] < thr[None, :], b_conv[None, :], NEG)

    wfc_pad = jnp.zeros((PACK32, LANES), jnp.float32)
    wfc_pad = wfc_pad.at[:PACK, :NUM_CLASSES].set(wfc)
    bfc_pad = jnp.zeros((1, LANES), jnp.float32).at[:, :NUM_CLASSES].set(bfc)

    const = jnp.zeros((CONST_ROWS, LANES), jnp.float32)
    const = const.at[WF_ROW:WF_ROW + VOCAB_PAD, :].set(w_fused)
    const = const.at[WFC_ROW:WFC_ROW + PACK32, :].set(wfc_pad)
    const = const.at[BMASK_ROW:BMASK_ROW + N_TOK, 0:PACK32].set(bias_mask)
    const = const.at[BFC_ROW:BFC_ROW + 1, :].set(bfc_pad)
    return const


# --- per-call forward: tiny token prep + one pallas_call -----------------------
@jax.jit
def textcnn_forward(context, mask, const_slab):
    tok = jnp.stack([context.reshape(-1).astype(jnp.float32),
                     mask.reshape(-1).astype(jnp.float32)], axis=1)  # (32,2)

    flops = 2 * N_TOK * VOCAB_PAD * LANES + 2 * OUT_ROWS * PACK32 * LANES
    bytes_accessed = 4 * (tok.size + const_slab.size + OUT_ROWS * LANES)

    vmem = pl.BlockSpec(memory_space=pltpu.MemorySpace.VMEM)
    out = pl.pallas_call(
        textcnn_kernel,
        out_shape=jax.ShapeDtypeStruct((OUT_ROWS, LANES), jnp.float32),
        in_specs=[vmem, vmem],
        out_specs=vmem,
        cost_estimate=pl.CostEstimate(flops=flops, transcendentals=0,
                                      bytes_accessed=bytes_accessed),
    )(tok, const_slab)
    return out[:B, :NUM_CLASSES]


# --- parameter init (same parametrization as before) --------------------------
def init_params(key):
    keys = jax.random.split(key, 3 + 2 * len(FILTER_SIZES))
    emb = 0.1 * jax.random.normal(keys[0], (VOCAB_PAD, H), jnp.float32)
    conv_ws, conv_bs = [], []
    for i, k in enumerate(FILTER_SIZES):
        w = 0.1 * jax.random.normal(keys[1 + 2 * i], (k, H, NUM_FILTERS),
                                    jnp.float32)
        b = 0.1 * jax.random.normal(keys[2 + 2 * i], (1, NUM_FILTERS),
                                    jnp.float32)
        conv_ws.append(w)
        conv_bs.append(b)
    wfc = 0.1 * jax.random.normal(keys[-2],
                                  (NUM_FILTERS * len(FILTER_SIZES),
                                   NUM_CLASSES), jnp.float32)
    bfc = 0.1 * jax.random.normal(keys[-1], (1, NUM_CLASSES), jnp.float32)
    return emb, conv_ws, conv_bs, wfc, bfc


# --- pure-JAX reference mirroring the PyTorch forward --------------------------
def reference_forward(context, mask, emb, conv_ws, conv_bs, wfc, bfc):
    enc = emb[context] * mask[..., None]                     # (B, S, H)
    feats = []
    for k, w, b in zip(FILTER_SIZES, conv_ws, conv_bs):
        T = S - k + 1
        conv = jnp.zeros((B, T, NUM_FILTERS), jnp.float32)
        for j in range(k):
            conv = conv + jnp.einsum("bth,hf->btf", enc[:, j:j + T, :], w[j])
        act = jnp.maximum(conv + b, 0.0)                     # ReLU
        feats.append(jnp.max(act, axis=1))                   # max-pool over t
    feat = jnp.concatenate(feats, axis=1)                    # (B, 24)
    return feat @ wfc + bfc                                  # (B, C)


if __name__ == "__main__":
    key = jax.random.PRNGKey(0)
    pkey, ckey, mkey = jax.random.split(key, 3)

    emb, conv_ws, conv_bs, wfc, bfc = init_params(pkey)
    # One-time weight packing / emb @ W_all fusion (not in the per-call path).
    const_slab = jax.block_until_ready(
        prepare_constants(emb, conv_ws, conv_bs, wfc, bfc))

    # x = (context, seq_len, mask) in the PyTorch module; seq_len unused here.
    context = jax.random.randint(ckey, (B, S), 0, VOCAB)           # token ids
    mask = (jax.random.uniform(mkey, (B, S)) > 0.2).astype(jnp.float32)

    logits = textcnn_forward(context, mask, const_slab)
    jax.block_until_ready(logits)
    assert logits.shape == (B, NUM_CLASSES)

    ref = reference_forward(context, mask, emb, conv_ws, conv_bs, wfc, bfc)
    err = float(jnp.max(jnp.abs(logits - ref)))
    assert err < 1e-4, f"kernel/reference mismatch: max abs err = {err}"
    print("KERNEL_OK")
</pallas_src>

<mosaic_0001>
module attributes {stable_mosaic.version = 11 : i64} {
  func.func @textcnn_kernel(%arg0: memref<32x2xf32, #tpu.memory_space<vmem>>, %arg1: memref<104x128xf32, #tpu.memory_space<vmem>>, %arg2: memref<8x128xf32, #tpu.memory_space<vmem>>) attributes {dimension_semantics = [], scalar_prefetch = 0 : i64, scratch_operands = 0 : i64, tpu.core_type = #tpu.core_type<tc>} {
    %c0 = arith.constant 0 : index
    %c0_0 = arith.constant 0 : index
    %0 = vector.load %arg0[%c0, %c0_0] : memref<32x2xf32, #tpu.memory_space<vmem>>, vector<32x1xf32>
    %1 = arith.fptosi %0 : vector<32x1xf32> to vector<32x1xi32>
    %c0_1 = arith.constant 0 : index
    %c1 = arith.constant 1 : index
    %2 = vector.load %arg0[%c0_1, %c1] : memref<32x2xf32, #tpu.memory_space<vmem>>, vector<32x1xf32>
    %3 = tpu.iota {dimensions = array<i32: 1>} : vector<32x32xi32>
    %4 = vector.broadcast %1 : vector<32x1xi32> to vector<32x32xi32>
    %5 = arith.cmpi eq, %3, %4 : vector<32x32xi32>
    %cst = arith.constant 0.000000e+00 : f32
    %6 = vector.shape_cast %2 : vector<32x1xf32> to vector<32x1xf32>
    %7 = vector.broadcast %6 : vector<32x1xf32> to vector<32x32xf32>
    %8 = vector.broadcast %cst : f32 to vector<32x32xf32>
    %9 = arith.select %5, %7, %8 : vector<32x32xi1>, vector<32x32xf32>
    %c0_2 = arith.constant 0 : index
    %c0_3 = arith.constant 0 : index
    %10 = vector.load %arg1[%c0_2, %c0_3] : memref<104x128xf32, #tpu.memory_space<vmem>>, vector<32x128xf32>
    %cst_4 = arith.constant dense<0.000000e+00> : vector<32x128xf32>
    %11 = tpu.matmul %9, %10, %cst_4 {dimension_numbers = #tpu.dot_dimension_numbers<[1], [0], [0], [1], [0, 0, 1, 1], [], []>} : vector<32x32xf32>, vector<32x128xf32>, vector<32x128xf32> -> vector<32x128xf32>
    %12 = vector.extract_strided_slice %11 {offsets = [0, 0], sizes = [32, 32], strides = [1, 1]} : vector<32x128xf32> to vector<32x32xf32>
    %c31_i32 = arith.constant 31 : i32
    %13 = tpu.dynamic_rotate %11 by %c31_i32 dim 0 : vector<32x128xf32>, i32 -> vector<32x128xf32>
    %14 = vector.extract_strided_slice %13 {offsets = [0, 32], sizes = [32, 32], strides = [1, 1]} : vector<32x128xf32> to vector<32x32xf32>
    %15 = arith.addf %12, %14 : vector<32x32xf32>
    %c30_i32 = arith.constant 30 : i32
    %16 = tpu.dynamic_rotate %11 by %c30_i32 dim 0 : vector<32x128xf32>, i32 -> vector<32x128xf32>
    %17 = vector.extract_strided_slice %16 {offsets = [0, 64], sizes = [32, 32], strides = [1, 1]} : vector<32x128xf32> to vector<32x32xf32>
    %18 = arith.addf %15, %17 : vector<32x32xf32>
    %c29_i32 = arith.constant 29 : i32
    %19 = tpu.dynamic_rotate %11 by %c29_i32 dim 0 : vector<32x128xf32>, i32 -> vector<32x128xf32>
    %20 = vector.extract_strided_slice %19 {offsets = [0, 96], sizes = [32, 32], strides = [1, 1]} : vector<32x128xf32> to vector<32x32xf32>
    %21 = arith.addf %18, %20 : vector<32x32xf32>
    %c64 = arith.constant 64 : index
    %c0_5 = arith.constant 0 : index
    %22 = vector.load %arg1[%c64, %c0_5] : memref<104x128xf32, #tpu.memory_space<vmem>>, vector<32x32xf32>
    %23 = arith.addf %21, %22 : vector<32x32xf32>
    %cst_6 = arith.constant 0.000000e+00 : f32
    %24 = vector.broadcast %cst_6 : f32 to vector<32x32xf32>
    %25 = arith.maximumf %23, %24 : vector<32x32xf32>
    %26 = vector.shape_cast %25 : vector<32x32xf32> to vector<2x16x32xf32>
    %cst_7 = arith.constant dense<0xFF800000> : vector<2x32xf32>
    %27 = vector.multi_reduction <maximumf>, %26, %cst_7 [1] : vector<2x16x32xf32> to vector<2x32xf32>
    %cst_8 = arith.constant 0.000000e+00 : f32
    %28 = vector.broadcast %cst_8 : f32 to vector<6x32xf32>
    %29 = tpu.concatenate %27, %28 in 0 : vector<2x32xf32>, vector<6x32xf32> -> vector<8x32xf32>
    %c32 = arith.constant 32 : index
    %c0_9 = arith.constant 0 : index
    %30 = vector.load %arg1[%c32, %c0_9] : memref<104x128xf32, #tpu.memory_space<vmem>>, vector<32x128xf32>
    %cst_10 = arith.constant dense<0.000000e+00> : vector<8x128xf32>
    %31 = tpu.matmul %29, %30, %cst_10 {dimension_numbers = #tpu.dot_dimension_numbers<[1], [0], [0], [1], [0, 0, 1, 1], [], []>} : vector<8x32xf32>, vector<32x128xf32>, vector<8x128xf32> -> vector<8x128xf32>
    %c96 = arith.constant 96 : index
    %c0_11 = arith.constant 0 : index
    %32 = vector.load %arg1[%c96, %c0_11] : memref<104x128xf32, #tpu.memory_space<vmem>>, vector<1x128xf32>
    %33 = vector.broadcast %32 : vector<1x128xf32> to vector<8x128xf32>
    %34 = arith.addf %31, %33 : vector<8x128xf32>
    %c0_12 = arith.constant 0 : index
    %c0_13 = arith.constant 0 : index
    %35 = vector.load %arg2[%c0_12, %c0_13] : memref<8x128xf32, #tpu.memory_space<vmem>>, vector<8x128xf32>
    tpu.vector_store %arg2[%c0_12, %c0_13], %34 {strides = array<i32>} : memref<8x128xf32, #tpu.memory_space<vmem>>, vector<8x128xf32>,
    return
  }
}

</mosaic_0001>

<bundles_post_ra>
// kernel: textcnn_forward.1
= control target key start
LH: loop header
LB: loop body
LE: loop exit
PB: predicated region body
PF: predicated region fallthrough
CT: control target
= control target key end

     0   :  { %7 = vsyncpa [#allocation3], 0  ;;  %s497_s9 = smov [#allocation2]   ;;  %s583_s0 = inlined_call_operand.vmem [shape: f32[32,2], index: 0, kind: input, shape index: {}]   ;;  %s584_s1 = inlined_call_operand.hbm [shape: f32[104,128], index: 1, kind: input, shape index: {}]   ;;  %s585_s2 = inlined_call_operand.vmem [shape: f32[8,128], index: 2, kind: output, shape index: {}]  }
   0x1   :  { %s15_s10 = sshll.u32 %s497_s9, 4  ;;  %s473_s13 = scalar_lea.hbm %s584_s1, 1664  ;;  %s16_s10 = int_to_ptr.vmem [resolvable:$true] %s15_s10 }
   0x2   :  { %p474_p0 = scmp.ne.s32.totalorder %s584_s1, %s473_s13  ;;  %p477_p1 = scmp.lt.u32.totalorder %s473_s13, %s584_s1 }
   0x4   :  { %p479_p2 = pnand %p477_p1, %p474_p0 }
   0x6   :  { %482 = shalt.err (!%p479_p2)
}
   0x7   :  { %s483_s18 = scalar_lea.vmem %s16_s10, 1664  ;;  %p488_p4 = scmp.lt.s32.totalorder %s16_s10, %s16_s10 }
   0x8   :  { %p484_p3 = scmp.ne.s32.totalorder %s16_s10, %s483_s18  ;;  %p489_p5 = scmp.lt.s32.totalorder %s483_s18, %s483_s18 }
   0xa   :  { %p490_p6 = por %p489_p5, %p488_p4 }
   0xc   :  { %p491_p7 = pnand %p490_p6, %p484_p3 }
   0xe   :  { %494 = shalt.err (!%p491_p7)
}
   0xf   :  { %s498_s19 = smov 128   ;;  %s499_s20 = smov 8  }
  0x10   :  { %21 = dma.hbm_to_vmem [thread:$0]  %s584_s1, 1664, %s16_s10, [#allocation3], %s498_s19, %s498_s19, %s499_s20  }
  0x11   :  { %495 = dma.done.wait [#allocation3], 1664  }
  0x12   :  { %496 = vsyncadd [#allocation3], 4294965632  ;;  %v500_v0 = vmov 1   ;;  %v501_v1 = vmov 0   ;;  %v25_v2 = vld [vmem:[%s583_s0] sm:$0xff]  ;;  %v26_v3 = vld [vmem:[%s583_s0 + $0x8] sm:$0xff]  ;;  %v33_v20 = vlaneseq }
  0x13   :  { %468 = vset.pattern.permute.xlu1 %v500_v0  ;;  %469 = vset.pattern.permute.xlu0 %v501_v1  ;;  %v28_v4 = vld [vmem:[%s583_s0 + $0x18] sm:$0xff]  ;;  %v449_v5 = vtrunc.f32 %v25_v2  ;;  %v451_v6 = vtrunc.f32 %v26_v3  ;;  %v75_v7 = vld [vmem:[#allocation2] sm:$0xff]  ;;  %v76_v8 = vld [vmem:[#allocation2 + $0x8] sm:$0xff]  ;;  %vm79_vm0 = vcmask 261120   ;;  %s503_s30 = smov 64   ;;  %s504_s3 = smov 32  }
  0x14   :  { %53 = vperm.xlu1 %468, %v25_v2   ;;  %v455_v9 = vtrunc.f32 %v28_v4  ;;  %v27_v10 = vld [vmem:[%s583_s0 + $0x10] sm:$0xff]  ;;  %v435_v11 = vpack.c.bf16 %v76_v8, %v75_v7  ;;  %v78_v14 = vld [vmem:[#allocation2 + $0x18] sm:$0xff]  ;;  %v34_v22 = vand.u32 127, %v33_v20  ;;  %v182_v34 = vshrl.u32 %v33_v20, 7  ;;  %s502_s0 = smov 96   ;;  %v303_v63 = vld [vmem:[#allocation2 + $0x20] sm:$0xff] }
  0x15   :  { %v450_v12 = vcvt.f32.s32 %v449_v5  ;;  %v77_v13 = vld [vmem:[#allocation2 + $0x10] sm:$0xff]  ;;  %v452_v15 = vcvt.f32.s32 %v451_v6  ;;  %v453_v16 = vtrunc.f32 %v27_v10  ;;  %vm506_vm8 = vmmov 0  }
  0x16   :  { %436 = vmatprep.subr.bf16.mxu0 %v435_v11  ;;  %v439_v17 = vpack.c.bf16 %v78_v14, %v77_v13  ;;  %v456_v18 = vcvt.f32.s32 %v455_v9  ;;  %vm183_vm5 = vcmp.lt.s32.totalorder %v182_v34, 7  ;;  %vm212_vm6 = vcmp.lt.s32.totalorder %v182_v34, 6  ;;  %v305_v2 = vld [vmem:[#allocation2 + $0x30] sm:$0xff] }
  0x17   :  { %36 = vperm.xlu0 %469, %v450_v12   ;;  %438 = vmatpush3.bf16.msra.mxu0 %v435_v11  ;;  %v454_v19 = vcvt.f32.s32 %v453_v16  ;;  %vm241_vm7 = vcmp.lt.s32.totalorder %v182_v34, 5  ;;  %v507_v5 = vmov 0.0   ;;  %vm298_vm9 = vcmask 1041409  }
  0x18   :  { %58 = vperm.xlu1 %468, %v26_v3   ;;  %440 = vmatprep.subr.bf16.mxu0 %v439_v17  ;;  %v306_v3 = vld [vmem:[#allocation2 + $0x38] sm:$0xff]  ;;  %vm301_vm10 = vcmask 1041408  }
  0x19   :  { %432 = vmatprep.mubr.msk.f32.mxu1 %vm506_vm8, %v507_v5  ;;  %v447_v6 = vpack.c.bf16 %v306_v3, %v305_v2 }
  0x1b   :  { %39 = vperm.xlu0 %469, %v452_v15   ;;  %442 = vmatpush3.bf16.msra.mxu0 %v439_v17 }
  0x1c   :  { %471 = vset.pattern.permute.xlu1 %v501_v1 }
  0x1d   :  { %45 = vperm.xlu1 %471, %v456_v18  }
  0x1f   :  { %42 = vperm.xlu0 %469, %v454_v19   ;;  %v266_v19 = vld [vmem:[#allocation2 + $0x40] sm:$0xff] }
  0x21   :  { %472 = vset.pattern.permute.xlu1 %v500_v0 }
  0x22   :  { %68 = vperm.xlu1 %472, %v28_v4   ;;  %v505_v4 = vmov 0.0|0.0  }
  0x23   :  { %470 = vset.pattern.permute.xlu0 %v500_v0  ;;  %v304_v0 = vld [vmem:[#allocation2 + $0x28] sm:$0xff]  ;;  %443 = vmatprep.subr.bf16.mxu1 %v505_v4 }
  0x24   :  { %63 = vperm.xlu0 %470, %v27_v10   ;;  %v444_v1 = vpack.c.bf16 %v304_v0, %v303_v63  ;;  %v395_v63 = vld [vmem:[#allocation2 + $0x60] ss:$0 sm:$0xff] }
  0x26   :  { %445 = vmatpush3.bf16.msra.mxu1 %v444_v1 }
  0x27   :  { %446 = vmatprep.subr.bf16.mxu1 %v505_v4 }
  0x2a   :  { %448 = vmatpush3.bf16.msra.mxu1 %v447_v6 }
  0x93   :  { %v54_v21 = vpop.permute.xlu1 %53 }
  0x96   :  { %v37_v23 = vpop.permute.xlu0 %36 }
  0x97   :  { %vm47_vm1 = vcmp.eq.s32.totalorder %v34_v22, %v37_v23  ;;  %v59_v24 = vpop.permute.xlu1 %58 }
  0x98   :  { %v71_v25 = vsel %vm47_vm1, %v54_v21, 0.0 }
  0x99   :  { %418 = vmatprep.mubr.msk.f32.mxu0 %vm79_vm0, %v71_v25 }
  0x9a   :  { %v40_v26 = vpop.permute.xlu0 %39 }
  0x9b   :  { %vm48_vm2 = vcmp.eq.s32.totalorder %v34_v22, %v40_v26 }
  0x9c   :  { %v72_v27 = vsel %vm48_vm2, %v59_v24, 0.0  ;;  %v46_v28 = vpop.permute.xlu1 %45 }
  0x9d   :  { %419 = vmatmul.mubr.msk.f32.vlgmr.msra.gmra.mrb[0].mxu0 %vm79_vm0, %v72_v27  ;;  %vm50_vm3 = vcmp.eq.s32.totalorder %v34_v22, %v46_v28  ;;  %v268_v27 = vld [vmem:[#allocation2 + $0x50] sm:$0xff]  ;;  %v267_v28 = vld [vmem:[#allocation2 + $0x48] sm:$0xff] }
  0x9e   :  { %v43_v29 = vpop.permute.xlu0 %42 }
  0x9f   :  { %vm49_vm4 = vcmp.eq.s32.totalorder %v34_v22, %v43_v29 }
  0xa1   :  { %v69_v30 = vpop.permute.xlu1 %68 }
  0xa2   :  { %v74_v33 = vsel %vm50_vm3, %v69_v30, 0.0 }
  0xa3   :  { %v64_v31 = vpop.permute.xlu0 %63 }
  0xa4   :  { %v73_v32 = vsel %vm49_vm4, %v64_v31, 0.0 }
  0xa5   :  { %421 = vmatprep.mubr.msk.f32.mxu0 %vm79_vm0, %v73_v32 }
  0xa6   :  { %422 = vmatmul.mubr.msk.f32.gmra.mrb[2].mxu0 %vm79_vm0, %v74_v33 }
 0x170   :  { %v551_v35 = vpop.f32.mrb[0].mxu0 }
 0x171   :  { %v178_v36 = vrot.slane %v551_v35, 1  ;;  %v209_v37 = vrot.slane %v551_v35, 2  ;;  %v238_v38 = vrot.slane %v551_v35, 3  ;;  %v158_v39 = vpop.f32.mrb[1].mxu0 }
 0x172   :  { %v177_v40 = vrot.slane %v158_v39, 1  ;;  %v208_v41 = vrot.slane %v158_v39, 2  ;;  %v237_v42 = vrot.slane %v158_v39, 3 }
 0x174   :  { %v186_v43 = vsel %vm183_vm5, %v177_v40, %v178_v36  ;;  %v215_v44 = vsel %vm212_vm6, %v208_v41, %v209_v37  ;;  %v244_v45 = vsel %vm241_vm7, %v237_v42, %v238_v38 }
 0x175   :  { %192 = vrot.lane.b32.xlu1 %v186_v43, %s502_s0 }
 0x179   :  { %221 = vrot.lane.b32.xlu1 %v215_v44, %s503_s30  ;;  %v559_v46 = vpop.f32.mrb[2].mxu0 }
 0x17a   :  { %v180_v47 = vrot.slane %v559_v46, 1  ;;  %v211_v48 = vrot.slane %v559_v46, 2  ;;  %v240_v49 = vrot.slane %v559_v46, 3  ;;  %v168_v50 = vpop.f32.mrb[3].mxu0 }
 0x17b   :  { %v179_v51 = vrot.slane %v168_v50, 1  ;;  %v210_v52 = vrot.slane %v168_v50, 2  ;;  %v239_v53 = vrot.slane %v168_v50, 3 }
 0x17c   :  { %v187_v54 = vsel %vm183_vm5, %v180_v47, %v177_v40  ;;  %v216_v55 = vsel %vm212_vm6, %v211_v48, %v208_v41  ;;  %v245_v56 = vsel %vm241_vm7, %v240_v49, %v237_v42 }
 0x17d   :  { %250 = vrot.lane.b32.xlu1 %v244_v45, %s504_s3  ;;  %198 = vrot.lane.b32.xlu0 %v187_v54, %s502_s0  ;;  %v184_v57 = vsel %vm183_vm5, %v179_v51, %v180_v47  ;;  %v185_v58 = vsel %vm183_vm5, %v178_v36, %v179_v51  ;;  %v213_v59 = vsel %vm212_vm6, %v210_v52, %v211_v48 }
 0x17e   :  { %v214_v60 = vsel %vm212_vm6, %v209_v37, %v210_v52  ;;  %v242_v61 = vsel %vm241_vm7, %v239_v53, %v240_v49  ;;  %v243_v62 = vsel %vm241_vm7, %v238_v38, %v239_v53  ;;  %v269_v37 = vld [vmem:[#allocation2 + $0x58] sm:$0xff] }
 0x181   :  { %227 = vrot.lane.b32.xlu0 %v216_v55, %s503_s30  ;;  %196 = vrot.lane.b32.xlu1 %v184_v57, %s502_s0 }
 0x185   :  { %194 = vrot.lane.b32.xlu0 %v185_v58, %s502_s0  ;;  %225 = vrot.lane.b32.xlu1 %v213_v59, %s503_s30 }
 0x189   :  { %223 = vrot.lane.b32.xlu0 %v214_v60, %s503_s30  ;;  %254 = vrot.lane.b32.xlu1 %v242_v61, %s504_s3 }
 0x18d   :  { %252 = vrot.lane.b32.xlu0 %v243_v62, %s504_s3 }
 0x191   :  { %256 = vrot.lane.b32.xlu0 %v245_v56, %s504_s3 }
 0x1e7   :  { %v193_v7 = vpop.permute.xlu1 %192 }
 0x1e8   :  { %v204_v13 = vadd.f32 %v193_v7, %v158_v39 }
 0x1eb   :  { %v222_v8 = vpop.permute.xlu1 %221 }
 0x1ec   :  { %v233_v16 = vadd.f32 %v222_v8, %v204_v13 }
 0x1ef   :  { %v251_v9 = vpop.permute.xlu1 %250  ;;  %v199_v10 = vpop.permute.xlu0 %198 }
 0x1f0   :  { %v262_v17 = vadd.f32 %v251_v9, %v233_v16  ;;  %v207_v30 = vadd.f32 %v559_v46, %v199_v10 }
 0x1f2   :  { %v270_v24 = vadd.f32 %v266_v19, %v262_v17 }
 0x1f3   :  { %v228_v11 = vpop.permute.xlu0 %227  ;;  %v197_v12 = vpop.permute.xlu1 %196 }
 0x1f4   :  { %v206_v18 = vadd.f32 %v197_v12, %v168_v50  ;;  %v274_v32 = vmax.f32 %v270_v24, 0.0  ;;  %v236_v33 = vadd.f32 %v228_v11, %v207_v30 }
 0x1f7   :  { %v195_v14 = vpop.permute.xlu0 %194  ;;  %v226_v15 = vpop.permute.xlu1 %225 }
 0x1f8   :  { %v205_v22 = vadd.f32 %v551_v35, %v195_v14  ;;  %v235_v23 = vadd.f32 %v226_v15, %v206_v18  ;;  %v278_v35 = vsel %vm79_vm0, %v274_v32, -inf }
 0x1fb   :  { %v224_v20 = vpop.permute.xlu0 %223  ;;  %v255_v21 = vpop.permute.xlu1 %254 }
 0x1fc   :  { %v234_v25 = vadd.f32 %v224_v20, %v205_v22  ;;  %v264_v26 = vadd.f32 %v255_v21, %v235_v23 }
 0x1fe   :  { %v272_v34 = vadd.f32 %v268_v27, %v264_v26 }
 0x1ff   :  { %v253_v29 = vpop.permute.xlu0 %252 }
 0x200   :  { %v263_v31 = vadd.f32 %v253_v29, %v234_v25  ;;  %v276_v41 = vmax.f32 %v272_v34, 0.0 }
 0x202   :  { %v271_v36 = vadd.f32 %v267_v28, %v263_v31  ;;  %v287_v46 = vsel %vm79_vm0, %v276_v41, -inf }
 0x203   :  { %v257_v38 = vpop.permute.xlu0 %256 }
 0x204   :  { %v275_v39 = vmax.f32 %v271_v36, 0.0  ;;  %v265_v40 = vadd.f32 %v257_v38, %v236_v33 }
 0x206   :  { %v279_v42 = vsel %vm79_vm0, %v275_v39, -inf  ;;  %v273_v43 = vadd.f32 %v269_v37, %v265_v40 }
 0x207   :  { %v280_v44 = vmax.f32 %v278_v35, %v279_v42 }
 0x208   :  { %v277_v45 = vmax.f32 %v273_v43, 0.0 }
 0x209   :  { %v281_v47 = vrot.slane %v280_v44, 4 }
 0x20a   :  { %v288_v48 = vsel %vm79_vm0, %v277_v45, -inf }
 0x20b   :  { %v282_v49 = vmax.f32 %v280_v44, %v281_v47  ;;  %v289_v50 = vmax.f32 %v287_v46, %v288_v48 }
 0x20d   :  { %v283_v51 = vrot.slane %v282_v49, 2  ;;  %v290_v52 = vrot.slane %v289_v50, 4 }
 0x20f   :  { %v284_v53 = vmax.f32 %v282_v49, %v283_v51  ;;  %v291_v54 = vmax.f32 %v289_v50, %v290_v52 }
 0x211   :  { %v292_v55 = vrot.slane %v291_v54, 2  ;;  %v285_v57 = vrot.slane %v284_v53, 1 }
 0x213   :  { %v293_v56 = vmax.f32 %v291_v54, %v292_v55  ;;  %v286_v59 = vmax.f32 %v284_v53, %v285_v57 }
 0x215   :  { %v294_v58 = vrot.slane %v293_v56, 1 }
 0x217   :  { %v295_v60 = vmax.f32 %v293_v56, %v294_v58 }
 0x219   :  { %v299_v61 = vsel %vm298_vm9, %v295_v60, %v286_v59 }
 0x21a   :  { %v302_v62 = vsel %vm301_vm10, %v299_v61, 0.0 }
 0x21b   :  { %433 = vmatmul.mubr.msk.f32.vlgmr.msra.gmra.mrb[0].mxu1 %vm79_vm0, %v302_v62 }
 0x2ee   :  { %v381_v0 = vpop.f32.mrb[0].mxu1 }
 0x2ef   :  { %v382_v1 = vadd.f32 %v395_v63, %v381_v0  ;;  %v434_v2 = vpop.f32.mrb[1].mxu1 }
 0x2f1   :  { %385 = vst [vmem:[%s585_s2] sm:$0xff] %v382_v1 }
 0x2f2   :  { %390 = vsyncpa [#allocation3], 1 }

</bundles_post_ra>
